<compile_context>
chip_gen: v5e
topology: v5e:2x2
jax: 0.10.0
libtpu: 0.0.40
codegen_flags: <defaults>
</compile_context>

<pallas_src>
import math
import jax
import jax.numpy as jnp
from jax import lax
from jax.experimental import pallas as pl
from jax.experimental.pallas import tpu as pltpu


# ----------------------------- Pallas linear layer -----------------------------
def _linear_kernel(x_ref, w_ref, b_ref, o_ref):
    # x: (rows, in_f), w: (out_f, in_f) (PyTorch layout), b: (1, out_f)
    x = x_ref[...].astype(jnp.bfloat16)
    w = w_ref[...].astype(jnp.bfloat16)
    acc = lax.dot_general(
        x, w,
        dimension_numbers=(((1,), (1,)), ((), ())),
        preferred_element_type=jnp.float32,
    )
    o_ref[...] = (acc + b_ref[...].astype(jnp.float32)).astype(o_ref.dtype)


def pallas_linear(x, w, b, out_dtype=None, row_tile=512):
    """x: (..., in_f), w: (out_f, in_f), b: (out_f,) -> (..., out_f)."""
    out_dtype = x.dtype if out_dtype is None else out_dtype
    orig_shape = x.shape
    in_f = orig_shape[-1]
    out_f = w.shape[0]
    x2 = x.reshape(-1, in_f)
    n = x2.shape[0]
    rt = n if n <= row_tile else row_tile          # full array or 512-row tiles
    out = pl.pallas_call(
        _linear_kernel,
        grid=(pl.cdiv(n, rt),),
        in_specs=[
            pl.BlockSpec((rt, in_f), lambda i: (i, 0)),
            pl.BlockSpec((out_f, in_f), lambda i: (0, 0)),
            pl.BlockSpec((1, out_f), lambda i: (0, 0)),
        ],
        out_specs=pl.BlockSpec((rt, out_f), lambda i: (i, 0)),
        out_shape=jax.ShapeDtypeStruct((n, out_f), out_dtype),
        compiler_params=pltpu.CompilerParams(dimension_semantics=("parallel",)),
    )(x2, w, b.reshape(1, -1))
    return out.reshape(*orig_shape[:-1], out_f)


# ------------------- key-aware deformable attention core kernel -----------------
def make_core_kernel(value_shapes, lq_tile, P, D, M):
    L = len(value_shapes)
    LP = L * P
    scale = 1.0 / math.sqrt(D)

    def kernel(v_ref, k_ref, q_ref, xy_ref, o_ref):
        # v_ref/k_ref: (M, len_v, D)   q_ref: (M, lq, D)   xy_ref: (M, lq, 2*L*P)
        # o_ref: (1, lq, M*D)  (lane-dense, channel = head*D + d)
        q = q_ref[...].astype(jnp.float32)                 # (M, lq, D)
        qb = q[:, :, None, :]                              # (M, lq, 1, D), hoisted
        xy = xy_ref[...].astype(jnp.float32)               # (M, lq, 2*L*P)

        # ---- pass 1: closed-form bilinear weights + sampled keys -> scores ----
        wmats = []
        score_parts = []
        start = 0
        for l, (H, W) in enumerate(value_shapes):          # static loop (few levels)
            HW = H * W
            x = xy[:, :, l * P:(l + 1) * P][..., None]            # (M, lq, P, 1)
            y = xy[:, :, LP + l * P:LP + (l + 1) * P][..., None]  # (M, lq, P, 1)

            pos = lax.broadcasted_iota(jnp.int32, (1, HW), 1)
            posx = (pos % W).astype(jnp.float32).reshape(1, 1, 1, HW)
            posy = (pos // W).astype(jnp.float32).reshape(1, 1, 1, HW)

            # bilinear "hat" weights; out-of-range taps get weight 0, which is
            # exactly grid_sample(padding_mode='zeros', align_corners=False)
            wx = jnp.maximum(1.0 - jnp.abs(x - posx), 0.0)
            wy = jnp.maximum(1.0 - jnp.abs(y - posy), 0.0)
            wmat = wx * wy                                         # (M, lq, P, HW)
            wmats.append(wmat)

            k_l = k_ref[:, start:start + HW, :].astype(jnp.bfloat16)   # (M, HW, D)
            sk = jnp.einsum(
                'bph,bhd->bpd',
                wmat.reshape(M, lq_tile * P, HW).astype(jnp.bfloat16), k_l,
                preferred_element_type=jnp.float32)                # (M, lq*P, D)
            sk = sk.reshape(M, lq_tile, P, D)
            score_parts.append(jnp.sum(qb * sk, axis=-1))          # (M, lq, P)
            start += HW

        scores = jnp.concatenate(score_parts, axis=-1) * scale     # (M, lq, L*P)
        scores = scores - jnp.max(scores, axis=-1, keepdims=True)
        e = jnp.exp(scores)
        attn = e * pl.reciprocal(jnp.sum(e, axis=-1, keepdims=True), approx=True)

        # ---- pass 2: fold attention into the value-sampling matmul ----
        out = jnp.zeros((M, lq_tile, D), jnp.float32)
        start = 0
        for l, (H, W) in enumerate(value_shapes):
            HW = H * W
            attn_l = attn[:, :, l * P:(l + 1) * P]                 # (M, lq, P)
            a_mat = jnp.sum(attn_l[..., None] * wmats[l], axis=2)  # (M, lq, HW)
            v_l = v_ref[:, start:start + HW, :].astype(jnp.bfloat16)
            out = out + jnp.einsum(
                'bqh,bhd->bqd', a_mat.astype(jnp.bfloat16), v_l,
                preferred_element_type=jnp.float32)                # (M, lq, D)
            start += HW

        # recombine heads -> lane-dense (lq, M*D) output slab (channel = m*D + d)
        for h in range(M):
            o_ref[0, :, h * D:(h + 1) * D] = out[h].astype(o_ref.dtype)

    return kernel


def core_attention(value_bm, key_bm, q_bm, xy_pk, value_shapes, P, M, lq_tile=None):
    BH, len_v, D = value_bm.shape
    bs = BH // M
    Lq = q_bm.shape[1]
    L = len(value_shapes)
    if lq_tile is None:
        # whole query block resident at small Lq; tile at 128 queries otherwise so
        # the dense bilinear-weight slabs fit VMEM and the pipeline can overlap.
        # TODO(synk): on v7x (64 MiB VMEM) halve this tile / set vmem_limit_bytes.
        lq_tile = Lq if Lq <= 128 else 128
    kernel = make_core_kernel(value_shapes, lq_tile, P, D, M)
    return pl.pallas_call(
        kernel,
        grid=(bs, pl.cdiv(Lq, lq_tile)),
        in_specs=[
            pl.BlockSpec((M, len_v, D), lambda b, j: (b, 0, 0)),          # value (all heads)
            pl.BlockSpec((M, len_v, D), lambda b, j: (b, 0, 0)),          # key   (all heads)
            pl.BlockSpec((M, lq_tile, D), lambda b, j: (b, j, 0)),        # projected query
            pl.BlockSpec((M, lq_tile, 2 * L * P), lambda b, j: (b, j, 0)),# packed x|y coords
        ],
        out_specs=pl.BlockSpec((1, lq_tile, M * D), lambda b, j: (b, j, 0)),
        out_shape=jax.ShapeDtypeStruct((bs, Lq, M * D), jnp.float32),
        compiler_params=pltpu.CompilerParams(
            dimension_semantics=("parallel", "parallel")),
    )(value_bm, key_bm, q_bm, xy_pk)


# ----------------------------- parameter init -----------------------------------
def _xavier_uniform(key, out_f, in_f):
    bound = math.sqrt(6.0 / (in_f + out_f))
    return jax.random.uniform(key, (out_f, in_f), jnp.float32, -bound, bound)


def init_params(key, d_model, n_levels, n_heads, n_points):
    k0, k1, k2, k3 = jax.random.split(key, 4)
    # sampling_offsets: weight = 0, bias = directional grid (same as _reset_parameters)
    thetas = jnp.arange(n_heads, dtype=jnp.float32) * (2.0 * math.pi / n_heads)
    grid_init = jnp.stack([jnp.cos(thetas), jnp.sin(thetas)], -1)
    grid_init = grid_init / jnp.max(jnp.abs(grid_init), axis=-1, keepdims=True)
    grid_init = jnp.tile(grid_init.reshape(n_heads, 1, 1, 2), (1, n_levels, n_points, 1))
    scales = jnp.arange(1, n_points + 1, dtype=jnp.float32).reshape(1, 1, n_points, 1)
    grid_init = grid_init * scales
    return {
        "sampling_offsets_w": jnp.zeros((n_heads * n_levels * n_points * 2, d_model), jnp.float32),
        "sampling_offsets_b": grid_init.reshape(-1),
        "value_proj_w": _xavier_uniform(k0, d_model, d_model),
        "value_proj_b": jnp.zeros((d_model,), jnp.float32),
        "key_proj_w": _xavier_uniform(k1, d_model, d_model),
        "key_proj_b": jnp.zeros((d_model,), jnp.float32),
        "query_proj_w": _xavier_uniform(k2, d_model, d_model),
        "query_proj_b": jnp.zeros((d_model,), jnp.float32),
        "output_proj_w": _xavier_uniform(k3, d_model, d_model),
        "output_proj_b": jnp.zeros((d_model,), jnp.float32),
    }


# ----------------------------- forward (module semantics) ------------------------
def ms_deform_attn_kda_forward(params, query, refer_bbox, input_flatten, value_shapes,
                               value_mask=None, *, n_heads=4, n_levels=2, n_points=4):
    # TODO(synk): only the default config (key_aware=True, same_loc=False, proj_key=True)
    # branch of MSDeformAttnKDA is implemented.
    bs, Lq, C = query.shape
    len_v = input_flatten.shape[1]
    assert sum(h * w for h, w in value_shapes) == len_v
    M, L, P = n_heads, n_levels, n_points
    D = C // M

    # fused value_proj + key_proj: one matmul over input_flatten, bf16 outputs
    vk_w = jnp.concatenate([params["value_proj_w"], params["key_proj_w"]], axis=0)
    vk_b = jnp.concatenate([params["value_proj_b"], params["key_proj_b"]], axis=0)
    vk = pallas_linear(input_flatten, vk_w, vk_b, out_dtype=jnp.bfloat16)
    value, key = vk[..., :C], vk[..., C:]
    if value_mask is not None:
        # replicate torch masked_fill(mask[..., None], 0): zero where mask is True
        value = jnp.where(value_mask[..., None], 0.0, value)
        key = jnp.where(value_mask[..., None], 0.0, key)

    # fused query_proj + sampling_offsets: one matmul over query, f32 outputs
    qo_w = jnp.concatenate([params["query_proj_w"], params["sampling_offsets_w"]], axis=0)
    qo_b = jnp.concatenate([params["query_proj_b"], params["sampling_offsets_b"]], axis=0)
    qo = pallas_linear(query, qo_w, qo_b)
    q_proj = qo[..., :C]
    sampling_offsets = qo[..., C:].reshape(bs, Lq, M, L, P, 2)

    num_pts = refer_bbox.shape[-1]
    wh = jnp.array([[w, h] for (h, w) in value_shapes], jnp.float32)  # (L, 2) = (W, H)
    if num_pts == 2:
        add = sampling_offsets / wh[None, None, None, :, None, :]
        sampling_locations = refer_bbox[:, :, None, :, None, :] + add
    elif num_pts == 4:
        add = sampling_offsets / P * refer_bbox[:, :, None, :, None, 2:] * 0.5
        sampling_locations = refer_bbox[:, :, None, :, None, :2] + add
    else:
        raise ValueError("refer_bbox last dim must be 2 or 4")

    # unnormalize to pixel coords once (grid_sample align_corners=False):
    # x = loc_x*W - 0.5, y = loc_y*H - 0.5; pack as (bs*M, Lq, 2*L*P) = [x-block | y-block]
    xy_unnorm = sampling_locations * wh[None, None, None, :, None, :] - 0.5
    xy_pk = xy_unnorm.transpose(0, 2, 1, 5, 3, 4).reshape(bs * M, Lq, 2 * L * P)
    xy_pk = xy_pk.astype(jnp.float32)

    q_bm = q_proj.reshape(bs, Lq, M, D).transpose(0, 2, 1, 3).reshape(bs * M, Lq, D)
    value_bm = value.reshape(bs, len_v, M, D).transpose(0, 2, 1, 3).reshape(bs * M, len_v, D)
    key_bm = key.reshape(bs, len_v, M, D).transpose(0, 2, 1, 3).reshape(bs * M, len_v, D)

    core = core_attention(value_bm, key_bm, q_bm, xy_pk, value_shapes, P, M)  # (bs, Lq, C)
    return pallas_linear(core, params["output_proj_w"], params["output_proj_b"])


# ----------------------------------- main ----------------------------------------
if __name__ == "__main__":
    d_model, n_heads, n_levels, n_points = 32, 4, 2, 4
    bs, Lq = 2, 8
    value_shapes = [(8, 8), (4, 4)]
    len_v = sum(h * w for h, w in value_shapes)

    key0 = jax.random.PRNGKey(0)
    kp, kq, kv, kr = jax.random.split(key0, 4)
    params = init_params(kp, d_model, n_levels, n_heads, n_points)
    query = jax.random.normal(kq, (bs, Lq, d_model), jnp.float32)
    input_flatten = jax.random.normal(kv, (bs, len_v, d_model), jnp.float32)
    refer_bbox = jax.random.uniform(kr, (bs, Lq, n_levels, 2), jnp.float32)

    out = ms_deform_attn_kda_forward(
        params, query, refer_bbox, input_flatten, value_shapes, None,
        n_heads=n_heads, n_levels=n_levels, n_points=n_points)
    jax.block_until_ready(out)
    assert out.shape == (bs, Lq, d_model)
    print("KERNEL_OK")
</pallas_src>

<mosaic_0001>
module attributes {stable_mosaic.version = 11 : i64} {
  func.func @_linear_kernel(%arg0: i32, %arg1: memref<160x32xf32, #tpu.memory_space<vmem>>, %arg2: memref<64x32xf32, #tpu.memory_space<vmem>>, %arg3: memref<1x64xf32, #tpu.memory_space<vmem>>, %arg4: memref<160x64xbf16, #tpu.memory_space<vmem>>) attributes {dimension_semantics = [#tpu.dimension_semantics<parallel>], iteration_bounds = array<i64: 1>, scalar_prefetch = 0 : i64, scratch_operands = 0 : i64, tpu.core_type = #tpu.core_type<tc>, window_params = [{transform_indices = @transform_0, window_bounds = array<i64: 160, 32>}, {pipeline_mode = #tpu.pipeline_mode<synchronous>, transform_indices = @transform_1, window_bounds = array<i64: 64, 32>}, {pipeline_mode = #tpu.pipeline_mode<synchronous>, transform_indices = @transform_2, window_bounds = array<i64: 1, 64>}, {transform_indices = @transform_3, window_bounds = array<i64: 160, 64>}]} {
    %c0 = arith.constant 0 : index
    %c0_0 = arith.constant 0 : index
    %0 = vector.load %arg1[%c0, %c0_0] : memref<160x32xf32, #tpu.memory_space<vmem>>, vector<160x32xf32>
    %1 = arith.truncf %0 : vector<160x32xf32> to vector<160x32xbf16>
    %c0_1 = arith.constant 0 : index
    %c0_2 = arith.constant 0 : index
    %2 = vector.load %arg2[%c0_1, %c0_2] : memref<64x32xf32, #tpu.memory_space<vmem>>, vector<64x32xf32>
    %3 = arith.truncf %2 : vector<64x32xf32> to vector<64x32xbf16>
    %cst = arith.constant dense<0.000000e+00> : vector<160x64xf32>
    %4 = tpu.matmul %1, %3, %cst {dimension_numbers = #tpu.dot_dimension_numbers<[1], [1], [0], [0], [0, 0, 1, 0], [], []>} : vector<160x32xbf16>, vector<64x32xbf16>, vector<160x64xf32> -> vector<160x64xf32>
    %c0_3 = arith.constant 0 : index
    %c0_4 = arith.constant 0 : index
    %5 = vector.load %arg3[%c0_3, %c0_4] : memref<1x64xf32, #tpu.memory_space<vmem>>, vector<1x64xf32>
    %6 = vector.broadcast %5 : vector<1x64xf32> to vector<160x64xf32>
    %7 = arith.addf %4, %6 : vector<160x64xf32>
    %8 = arith.truncf %7 : vector<160x64xf32> to vector<160x64xbf16>
    %c0_5 = arith.constant 0 : index
    %c0_6 = arith.constant 0 : index
    %9 = vector.load %arg4[%c0_5, %c0_6] : memref<160x64xbf16, #tpu.memory_space<vmem>>, vector<160x64xbf16>
    tpu.vector_store %arg4[%c0_5, %c0_6], %8 {strides = array<i32>} : memref<160x64xbf16, #tpu.memory_space<vmem>>, vector<160x64xbf16>,
    return
  }
  func.func @transform_0(%arg0: i32) -> (i32, i32) {
    %c0_i32 = arith.constant 0 : i32
    %c0_i32_0 = arith.constant 0 : i32
    return %arg0, %c0_i32 : i32, i32
  }
  func.func @transform_1(%arg0: i32) -> (i32, i32) {
    %c0_i32 = arith.constant 0 : i32
    %c0_i32_0 = arith.constant 0 : i32
    %c0_i32_1 = arith.constant 0 : i32
    return %c0_i32, %c0_i32_0 : i32, i32
  }
  func.func @transform_2(%arg0: i32) -> (i32, i32) {
    %c0_i32 = arith.constant 0 : i32
    %c0_i32_0 = arith.constant 0 : i32
    %c0_i32_1 = arith.constant 0 : i32
    return %c0_i32, %c0_i32_0 : i32, i32
  }
  func.func @transform_3(%arg0: i32) -> (i32, i32) {
    %c0_i32 = arith.constant 0 : i32
    %c0_i32_0 = arith.constant 0 : i32
    return %arg0, %c0_i32 : i32, i32
  }
}

</mosaic_0001>

<bundles_post_ra>
// kernel: tpu_custom_call.1
= control target key start
LH: loop header
LB: loop body
LE: loop exit
PB: predicated region body
PF: predicated region fallthrough
CT: control target
= control target key end

     0   :  { %vm61_vm0 = vcmask 261120   ;;  %vm183_vm1 = vcmask 519168   ;;  %s454_s1 = inlined_call_operand.vmem [shape: f32[64,32], index: 1, kind: input, shape index: {}]   ;;  %s455_s2 = inlined_call_operand.vmem [shape: f32[1,64], index: 2, kind: input, shape index: {}]   ;;  %s456_s0 = inlined_call_operand.vmem [shape: f32[160,32], index: 0, kind: input, shape index: {}]   ;;  %s457_s3 = inlined_call_operand.vmem [shape: bf16[160,64], index: 3, kind: output, shape index: {}]  }
   0x1   :  { %v51_v0 = vld [vmem:[%s454_s1 + $0x30] sm:$0xff]  ;;  %v52_v1 = vld [vmem:[%s454_s1 + $0x38] sm:$0xff]  ;;  %v49_v3 = vld [vmem:[%s454_s1 + $0x20] sm:$0xff] }
   0x2   :  { %v56_v2 = vpack.c.bf16 %v52_v1, %v51_v0  ;;  %v50_v4 = vld [vmem:[%s454_s1 + $0x28] sm:$0xff]  ;;  %v47_v8 = vld [vmem:[%s454_s1 + $0x10] sm:$0xff]  ;;  %v48_v9 = vld [vmem:[%s454_s1 + $0x18] sm:$0xff] }
   0x3   :  { %v55_v6 = vpack.c.bf16 %v50_v4, %v49_v3  ;;  %v54_v10 = vpack.c.bf16 %v48_v9, %v47_v8  ;;  %v45_v12 = vld [vmem:[%s454_s1] sm:$0xff]  ;;  %v46_v13 = vld [vmem:[%s454_s1 + $0x8] sm:$0xff]  ;;  %v29_v18 = vld [vmem:[%s456_s0 + $0x70] sm:$0xff] }
   0x4   :  { %v102_v5 = vsel %vm61_vm0, %v56_v2, 0  ;;  %v53_v14 = vpack.c.bf16 %v46_v13, %v45_v12  ;;  %v23_v16 = vld [vmem:[%s456_s0 + $0x40] sm:$0xff]  ;;  %v24_v17 = vld [vmem:[%s456_s0 + $0x48] sm:$0xff]  ;;  %v30_v19 = vld [vmem:[%s456_s0 + $0x78] sm:$0xff] }
   0x5   :  { %219 = vmatpush.bf16.xpose.msra.mxu2 %v102_v5  ;;  %220 = vmatpush.bf16.xpose.msra.mxu3 %v102_v5  ;;  %v99_v7 = vsel %vm61_vm0, %v55_v6, 0  ;;  %v96_v11 = vsel %vm61_vm0, %v54_v10, 0  ;;  %v15_v20 = vld [vmem:[%s456_s0] sm:$0xff]  ;;  %v16_v21 = vld [vmem:[%s456_s0 + $0x8] sm:$0xff]  ;;  %v39_v24 = vpack.c.bf16 %v24_v17, %v23_v16  ;;  %v42_v25 = vpack.c.bf16 %v30_v19, %v29_v18  ;;  %v25_v28 = vld [vmem:[%s456_s0 + $0x50] sm:$0xff] }
   0x6   :  { %108 = vmatpush.bf16.xpose.msra.mxu0 %v102_v5  ;;  %218 = vmatpush.bf16.xpose.msra.mxu1 %v102_v5  ;;  %v93_v15 = vsel %vm61_vm0, %v53_v14, 0  ;;  %v19_v22 = vld [vmem:[%s456_s0 + $0x20] sm:$0xff]  ;;  %v20_v23 = vld [vmem:[%s456_s0 + $0x28] sm:$0xff]  ;;  %v35_v26 = vpack.c.bf16 %v16_v21, %v15_v20  ;;  %v26_v29 = vld [vmem:[%s456_s0 + $0x58] sm:$0xff] }
   0x7   :  { %v37_v27 = vpack.c.bf16 %v20_v23, %v19_v22  ;;  %v31_v30 = vld [vmem:[%s456_s0 + $0x80] sm:$0xff]  ;;  %v32_v31 = vld [vmem:[%s456_s0 + $0x88] sm:$0xff]  ;;  %v17_v32 = vld [vmem:[%s456_s0 + $0x10] sm:$0xff]  ;;  %v40_v36 = vpack.c.bf16 %v26_v29, %v25_v28 }
   0x8   :  { %v18_v33 = vld [vmem:[%s456_s0 + $0x18] sm:$0xff]  ;;  %v21_v34 = vld [vmem:[%s456_s0 + $0x30] sm:$0xff]  ;;  %v43_v37 = vpack.c.bf16 %v32_v31, %v31_v30  ;;  %v27_v40 = vld [vmem:[%s456_s0 + $0x60] sm:$0xff] }
   0x9   :  { %v22_v35 = vld [vmem:[%s456_s0 + $0x38] sm:$0xff]  ;;  %v36_v38 = vpack.c.bf16 %v18_v33, %v17_v32  ;;  %v28_v41 = vld [vmem:[%s456_s0 + $0x68] sm:$0xff]  ;;  %v33_v42 = vld [vmem:[%s456_s0 + $0x90] sm:$0xff] }
   0xa   :  { %v38_v39 = vpack.c.bf16 %v22_v35, %v21_v34  ;;  %v34_v43 = vld [vmem:[%s456_s0 + $0x98] sm:$0xff]  ;;  %v41_v44 = vpack.c.bf16 %v28_v41, %v27_v40  ;;  %v352_v46 = vld [vmem:[%s455_s2] ss:$0 sm:$0xff] }
   0xb   :  { %v44_v45 = vpack.c.bf16 %v34_v43, %v33_v42 }
   0xd   :  { %222 = vmatpush.bf16.xpose.msra.mxu2 %v99_v7  ;;  %223 = vmatpush.bf16.xpose.msra.mxu3 %v99_v7 }
   0xe   :  { %109 = vmatpush.bf16.xpose.msra.mxu0 %v99_v7  ;;  %221 = vmatpush.bf16.xpose.msra.mxu1 %v99_v7 }
  0x15   :  { %225 = vmatpush.bf16.xpose.msra.mxu2 %v96_v11  ;;  %226 = vmatpush.bf16.xpose.msra.mxu3 %v96_v11 }
  0x16   :  { %110 = vmatpush.bf16.xpose.msra.mxu0 %v96_v11  ;;  %224 = vmatpush.bf16.xpose.msra.mxu1 %v96_v11 }
  0x1d   :  { %228 = vmatpush.bf16.xpose.msra.mxu2 %v93_v15  ;;  %229 = vmatpush.bf16.xpose.msra.mxu3 %v93_v15 }
  0x1e   :  { %111 = vmatpush.bf16.xpose.msra.mxu0 %v93_v15  ;;  %227 = vmatpush.bf16.xpose.msra.mxu1 %v93_v15 }
  0x24   :  { %212 = vmatmul.msk.bf16.vlgmr.msra.gmra.mxu2 %vm61_vm0, %v39_v24  ;;  %215 = vmatmul.msk.bf16.vlgmr.msra.gmra.mxu3 %vm61_vm0, %v42_v25 }
  0x25   :  { %208 = vmatmul.msk.bf16.vlgmr.msra.gmra.mxu0 %vm61_vm0, %v35_v26  ;;  %210 = vmatmul.msk.bf16.vlgmr.msra.gmra.mxu1 %vm61_vm0, %v37_v27 }
  0x34   :  { %213 = vmatmul.msk.bf16.gmra.mxu2 %vm61_vm0, %v40_v36  ;;  %216 = vmatmul.msk.bf16.gmra.mxu3 %vm61_vm0, %v43_v37 }
  0x35   :  { %209 = vmatmul.msk.bf16.gmra.mxu0 %vm61_vm0, %v36_v38  ;;  %211 = vmatmul.msk.bf16.gmra.mxu1 %vm61_vm0, %v38_v39 }
  0x44   :  { %214 = vmatmul.msk.bf16.gmra.mxu2 %vm61_vm0, %v41_v44  ;;  %217 = vmatmul.msk.bf16.gmra.mxu3 %vm61_vm0, %v44_v45 }
  0xa2   :  { %v113_v47 = vpop.f32.mrf.mxu0  ;;  %v123_v48 = vpop.f32.mrf.mxu1 }
  0xa3   :  { %v114_v49 = vadd.f32 %v352_v46, %v113_v47  ;;  %v124_v50 = vadd.f32 %v352_v46, %v123_v48 }
  0xa5   :  { %v163_v51 = vpack.c.bf16 %v114_v49, %v114_v49  ;;  %v167_v52 = vpack.c.bf16 %v124_v50, %v124_v50 }
  0xa7   :  { %v133_v53 = vpop.f32.mrf.mxu2  ;;  %v148_v54 = vpop.f32.mrf.mxu3  ;;  %184 = vst.msk [vmem:[%s457_s3] sm:$0xf] %vm183_vm1, %v163_v51 }
  0xa8   :  { %v134_v55 = vadd.f32 %v352_v46, %v133_v53  ;;  %v149_v56 = vadd.f32 %v352_v46, %v148_v54  ;;  %188 = vst.msk [vmem:[%s457_s3 + $0x10] sm:$0xf] %vm183_vm1, %v167_v52 }
  0xaa   :  { %v171_v57 = vpack.c.bf16 %v134_v55, %v134_v55  ;;  %v177_v58 = vpack.c.bf16 %v149_v56, %v149_v56  ;;  %v115_v59 = vpop.f32.mrf.mxu0  ;;  %v125_v60 = vpop.f32.mrf.mxu1 }
  0xab   :  { %v116_v61 = vadd.f32 %v352_v46, %v115_v59  ;;  %v126_v62 = vadd.f32 %v352_v46, %v125_v60 }
  0xac   :  { %192 = vst.msk [vmem:[%s457_s3 + $0x20] sm:$0xf] %vm183_vm1, %v171_v57 }
  0xad   :  { %198 = vst.msk [vmem:[%s457_s3 + $0x38] sm:$0xf] %vm183_vm1, %v177_v58  ;;  %v164_v63 = vpack.c.bf16 %v116_v61, %v116_v61  ;;  %v168_v0 = vpack.c.bf16 %v126_v62, %v126_v62 }
  0xaf   :  { %v135_v1 = vpop.f32.mrf.mxu2  ;;  %v150_v2 = vpop.f32.mrf.mxu3  ;;  %185 = vst.msk [vmem:[%s457_s3 + $0x4] sm:$0xf] %vm183_vm1, %v164_v63 }
  0xb0   :  { %v136_v3 = vadd.f32 %v352_v46, %v135_v1  ;;  %v151_v4 = vadd.f32 %v352_v46, %v150_v2  ;;  %189 = vst.msk [vmem:[%s457_s3 + $0x14] sm:$0xf] %vm183_vm1, %v168_v0 }
  0xb2   :  { %v172_v5 = vpack.c.bf16 %v136_v3, %v136_v3  ;;  %v178_v6 = vpack.c.bf16 %v151_v4, %v151_v4  ;;  %v118_v7 = vpop.f32.mrf.mxu0  ;;  %v128_v8 = vpop.f32.mrf.mxu1 }
  0xb3   :  { %v119_v9 = vadd.f32 %v352_v46, %v118_v7  ;;  %v129_v10 = vadd.f32 %v352_v46, %v128_v8 }
  0xb4   :  { %193 = vst.msk [vmem:[%s457_s3 + $0x24] sm:$0xf] %vm183_vm1, %v172_v5 }
  0xb5   :  { %199 = vst.msk [vmem:[%s457_s3 + $0x3c] sm:$0xf] %vm183_vm1, %v178_v6  ;;  %v165_v11 = vpack.c.bf16 %v119_v9, %v119_v9  ;;  %v169_v12 = vpack.c.bf16 %v129_v10, %v129_v10 }
  0xb7   :  { %v138_v13 = vpop.f32.mrf.mxu2  ;;  %v153_v14 = vpop.f32.mrf.mxu3  ;;  %186 = vst.msk [vmem:[%s457_s3 + $0x8] sm:$0xf] %vm183_vm1, %v165_v11 }
  0xb8   :  { %v139_v15 = vadd.f32 %v352_v46, %v138_v13  ;;  %v154_v16 = vadd.f32 %v352_v46, %v153_v14  ;;  %190 = vst.msk [vmem:[%s457_s3 + $0x18] sm:$0xf] %vm183_vm1, %v169_v12 }
  0xba   :  { %v173_v17 = vpack.c.bf16 %v139_v15, %v139_v15  ;;  %v179_v18 = vpack.c.bf16 %v154_v16, %v154_v16  ;;  %v120_v19 = vpop.f32.mrf.mxu0  ;;  %v130_v20 = vpop.f32.mrf.mxu1 }
  0xbb   :  { %v121_v21 = vadd.f32 %v352_v46, %v120_v19  ;;  %v131_v22 = vadd.f32 %v352_v46, %v130_v20 }
  0xbc   :  { %194 = vst.msk [vmem:[%s457_s3 + $0x28] sm:$0xf] %vm183_vm1, %v173_v17 }
  0xbd   :  { %200 = vst.msk [vmem:[%s457_s3 + $0x40] sm:$0xf] %vm183_vm1, %v179_v18  ;;  %v166_v23 = vpack.c.bf16 %v121_v21, %v121_v21  ;;  %v170_v24 = vpack.c.bf16 %v131_v22, %v131_v22 }
  0xbf   :  { %v140_v25 = vpop.f32.mrf.mxu2  ;;  %v155_v26 = vpop.f32.mrf.mxu3  ;;  %187 = vst.msk [vmem:[%s457_s3 + $0xc] sm:$0xf] %vm183_vm1, %v166_v23 }
  0xc0   :  { %v141_v27 = vadd.f32 %v352_v46, %v140_v25  ;;  %v156_v28 = vadd.f32 %v352_v46, %v155_v26  ;;  %191 = vst.msk [vmem:[%s457_s3 + $0x1c] sm:$0xf] %vm183_vm1, %v170_v24 }
  0xc2   :  { %v174_v29 = vpack.c.bf16 %v141_v27, %v141_v27  ;;  %v180_v30 = vpack.c.bf16 %v156_v28, %v156_v28 }
  0xc4   :  { %195 = vst.msk [vmem:[%s457_s3 + $0x2c] sm:$0xf] %vm183_vm1, %v174_v29 }
  0xc5   :  { %201 = vst.msk [vmem:[%s457_s3 + $0x44] sm:$0xf] %vm183_vm1, %v180_v30 }
  0xc7   :  { %v143_v31 = vpop.f32.mrf.mxu2  ;;  %v158_v32 = vpop.f32.mrf.mxu3 }
  0xc8   :  { %v144_v33 = vadd.f32 %v352_v46, %v143_v31  ;;  %v159_v34 = vadd.f32 %v352_v46, %v158_v32 }
  0xca   :  { %v175_v35 = vpack.c.bf16 %v144_v33, %v144_v33  ;;  %v181_v36 = vpack.c.bf16 %v159_v34, %v159_v34 }
  0xcc   :  { %196 = vst.msk [vmem:[%s457_s3 + $0x30] sm:$0xf] %vm183_vm1, %v175_v35 }
  0xcd   :  { %202 = vst.msk [vmem:[%s457_s3 + $0x48] sm:$0xf] %vm183_vm1, %v181_v36 }
  0xcf   :  { %v145_v37 = vpop.f32.mrf.mxu2  ;;  %v160_v38 = vpop.f32.mrf.mxu3 }
  0xd0   :  { %v146_v39 = vadd.f32 %v352_v46, %v145_v37  ;;  %v161_v40 = vadd.f32 %v352_v46, %v160_v38 }
  0xd2   :  { %v176_v41 = vpack.c.bf16 %v146_v39, %v146_v39  ;;  %v182_v42 = vpack.c.bf16 %v161_v40, %v161_v40 }
  0xd4   :  { %197 = vst.msk [vmem:[%s457_s3 + $0x34] sm:$0xf] %vm183_vm1, %v176_v41 }
  0xd5   :  { %203 = vst.msk [vmem:[%s457_s3 + $0x4c] sm:$0xf] %vm183_vm1, %v182_v42 }

</bundles_post_ra>
